<compile_context>
chip_gen: v5e
topology: v5e:2x2
jax: 0.10.0
libtpu: 0.0.40
codegen_flags: <defaults>
</compile_context>

<pallas_src>
import jax
import jax.numpy as jnp
import numpy as np
from jax import lax
from jax.experimental import pallas as pl
from jax.experimental.pallas import tpu as pltpu


def _round_up(x, m):
    return ((x + m - 1) // m) * m


_VP_CHUNK = 128  # one-hot chunk width along the (padded) vocabulary axis


# ---------------------------------------------------------------------------
# Fused kernel.
#   ids_ref    : VMEM (1, TM)  int32   token ids for this tile (lane-dense)
#   tableT_ref : VMEM (D, Vp)  f32     zero-padded embedding table, transposed
#   w_ref      : VMEM (D, D)   f32     linear weight, torch layout (out, in)
#   b_ref      : VMEM (D, 1)   f32     linear bias as a column
#   outT_ref   : VMEM (D, TM)  f32     transposed output tile (TM on lanes)
#   projT_ref  : VMEM (D, Vp)  f32     scratch: projected table (persists
#                                      across grid steps; computed on step 0)
# ---------------------------------------------------------------------------
def fused_entity_embedding_kernel(ids_ref, tableT_ref, w_ref, b_ref,
                                  outT_ref, projT_ref):
    # One-time projection of the whole table:  projT = W @ tableT + bias.
    @pl.when(pl.program_id(0) == 0)
    def _():
        projT_ref[...] = (
            jnp.dot(w_ref[...], tableT_ref[...],
                    preferred_element_type=jnp.float32)
            + b_ref[...]
        )

    ids = ids_ref[...]                       # (1, TM) int32
    d, tm = outT_ref.shape
    vp = projT_ref.shape[1]
    n_chunks = vp // _VP_CHUNK               # static (Vp is a multiple of 128)

    # Chunked one-hot gather:  outT[:, t] = projT[:, ids[t]]
    def body(c, acc):
        start = pl.multiple_of(c * _VP_CHUNK, _VP_CHUNK)
        proj_c = projT_ref[:, pl.ds(start, _VP_CHUNK)]            # (D, chunk)
        rows = (lax.broadcasted_iota(jnp.int32, (_VP_CHUNK, tm), 0)
                + c * _VP_CHUNK)                                  # (chunk, TM)
        one_hot = (rows == ids).astype(jnp.float32)               # (chunk, TM)
        return acc + jnp.dot(proj_c, one_hot,
                             preferred_element_type=jnp.float32)

    outT_ref[...] = lax.fori_loop(
        0, n_chunks, body, jnp.zeros((d, tm), jnp.float32), unroll=True)


def entity_embedding_forward(entity, table, weight, bias, *, tm=128):
    """entity: (B, S) int; table: (V, D); weight: torch layout (out, in); bias: (D,)."""
    B, S = entity.shape
    V, D = table.shape
    T = B * S

    TM = _round_up(tm, 128)                  # output lanes: multiple of 128
    Tp = _round_up(max(T, 1), TM)
    Vp = _round_up(V, 128)                   # full (8,128) tiles for the one-hot K dim

    # One-time prep (parameters: could be cached across forward calls).
    tableT = jnp.zeros((D, Vp), jnp.float32).at[:, :V].set(
        table.astype(jnp.float32).T)                       # (D, Vp)
    w = weight.astype(jnp.float32)                         # (D, D), out x in
    b = bias.astype(jnp.float32).reshape(D, 1)             # (D, 1)

    # Per-call prep: flatten + pad ids to a lane-dense (1, Tp) row.
    ids = jnp.zeros((1, Tp), jnp.int32).at[0, :T].set(
        entity.reshape(T).astype(jnp.int32))

    outT = pl.pallas_call(
        fused_entity_embedding_kernel,
        out_shape=jax.ShapeDtypeStruct((D, Tp), jnp.float32),
        grid=(Tp // TM,),
        in_specs=[
            pl.BlockSpec((1, TM), lambda i: (0, i)),       # ids
            pl.BlockSpec((D, Vp), lambda i: (0, 0)),       # tableT (constant)
            pl.BlockSpec((D, D), lambda i: (0, 0)),        # W      (constant)
            pl.BlockSpec((D, 1), lambda i: (0, 0)),        # bias   (constant)
        ],
        out_specs=pl.BlockSpec((D, TM), lambda i: (0, i)),
        scratch_shapes=[pltpu.VMEM((D, Vp), jnp.float32)],  # projT
        compiler_params=pltpu.CompilerParams(
            dimension_semantics=("arbitrary",),   # projT scratch carried across steps
            vmem_limit_bytes=48 * 1024 * 1024,
        ),
    )(ids, tableT, w, b)

    # Un-transpose in the wrapper (cheap XLA), drop id padding, restore (B, S, D).
    return outT.T[:T].reshape(B, S, D)


if __name__ == "__main__":
    key = jax.random.PRNGKey(0)
    k_embed, k_w, k_b, k_ids = jax.random.split(key, 4)

    num_entities = 20
    trans_units = 32           # D
    B, S = 2, 8                # B*S = 16 tokens -> single grid step

    # nn.Embedding weight = cat(zeros(7, D), entity_embed); padding_idx=0 row is zero.
    entity_embed = jax.random.normal(k_embed, (num_entities, trans_units), jnp.float32)
    table = jnp.concatenate(
        [jnp.zeros((7, trans_units), jnp.float32), entity_embed], axis=0)  # (V, D)
    V = table.shape[0]

    # nn.Linear(trans_units, trans_units): weight (out, in), bias (out,)
    bound = 1.0 / np.sqrt(trans_units)
    weight = jax.random.uniform(k_w, (trans_units, trans_units), jnp.float32,
                                minval=-bound, maxval=bound)
    bias = jax.random.uniform(k_b, (trans_units,), jnp.float32,
                              minval=-bound, maxval=bound)

    # entity index tensor (B, S), values in [0, V)
    entity = jax.random.randint(k_ids, (B, S), 0, V, jnp.int32)

    out = entity_embedding_forward(entity, table, weight, bias)
    out = jax.block_until_ready(out)

    # Pure-JAX reference of the PyTorch forward: embedding lookup then x @ W^T + b.
    ref = jnp.take(table, entity, axis=0) @ weight.T + bias
    np.testing.assert_allclose(np.asarray(out), np.asarray(ref), rtol=1e-5, atol=1e-5)

    print("KERNEL_OK")
</pallas_src>

<mosaic_0001>
module attributes {stable_mosaic.version = 11 : i64} {
  func.func @fused_entity_embedding_kernel(%arg0: i32, %arg1: memref<1x128xi32, #tpu.memory_space<vmem>>, %arg2: memref<32x128xf32, #tpu.memory_space<vmem>>, %arg3: memref<32x32xf32, #tpu.memory_space<vmem>>, %arg4: memref<32x1xf32, #tpu.memory_space<vmem>>, %arg5: memref<32x128xf32, #tpu.memory_space<vmem>>, %arg6: memref<32x128xf32, #tpu.memory_space<vmem>>) attributes {dimension_semantics = [#tpu.dimension_semantics<arbitrary>], iteration_bounds = array<i64: 1>, scalar_prefetch = 0 : i64, scratch_operands = 1 : i64, tpu.core_type = #tpu.core_type<tc>, window_params = [{transform_indices = @transform_0, window_bounds = array<i64: 1, 128>}, {pipeline_mode = #tpu.pipeline_mode<synchronous>, transform_indices = @transform_1, window_bounds = array<i64: 32, 128>}, {pipeline_mode = #tpu.pipeline_mode<synchronous>, transform_indices = @transform_2, window_bounds = array<i64: 32, 32>}, {pipeline_mode = #tpu.pipeline_mode<synchronous>, transform_indices = @transform_3, window_bounds = array<i64: 32, 1>}, {transform_indices = @transform_4, window_bounds = array<i64: 32, 128>}]} {
    %c0_i32 = arith.constant 0 : i32
    %0 = arith.cmpi eq, %arg0, %c0_i32 : i32
    %1 = arith.extui %0 : i1 to i32
    %c0_i32_0 = arith.constant 0 : i32
    %2 = arith.cmpi ne, %1, %c0_i32_0 : i32
    scf.if %2 {
      %c0_8 = arith.constant 0 : index
      %c0_9 = arith.constant 0 : index
      %20 = vector.load %arg3[%c0_8, %c0_9] : memref<32x32xf32, #tpu.memory_space<vmem>>, vector<32x32xf32>
      %c0_10 = arith.constant 0 : index
      %c0_11 = arith.constant 0 : index
      %21 = vector.load %arg2[%c0_10, %c0_11] : memref<32x128xf32, #tpu.memory_space<vmem>>, vector<32x128xf32>
      %cst_12 = arith.constant dense<0.000000e+00> : vector<32x128xf32>
      %22 = tpu.matmul %20, %21, %cst_12 {dimension_numbers = #tpu.dot_dimension_numbers<[1], [0], [0], [1], [0, 0, 1, 1], [], []>} : vector<32x32xf32>, vector<32x128xf32>, vector<32x128xf32> -> vector<32x128xf32>
      %c0_13 = arith.constant 0 : index
      %c0_14 = arith.constant 0 : index
      %23 = vector.load %arg4[%c0_13, %c0_14] : memref<32x1xf32, #tpu.memory_space<vmem>>, vector<32x1xf32>
      %24 = vector.broadcast %23 : vector<32x1xf32> to vector<32x128xf32>
      %25 = arith.addf %22, %24 : vector<32x128xf32>
      %c0_15 = arith.constant 0 : index
      %c0_16 = arith.constant 0 : index
      %26 = vector.load %arg6[%c0_15, %c0_16] : memref<32x128xf32, #tpu.memory_space<vmem>>, vector<32x128xf32>
      tpu.vector_store %arg6[%c0_15, %c0_16], %25 {strides = array<i32>} : memref<32x128xf32, #tpu.memory_space<vmem>>, vector<32x128xf32>,
    } else {
    }
    %c0 = arith.constant 0 : index
    %c0_1 = arith.constant 0 : index
    %3 = vector.load %arg1[%c0, %c0_1] : memref<1x128xi32, #tpu.memory_space<vmem>>, vector<1x128xi32>
    %cst = arith.constant 0.000000e+00 : f32
    %4 = vector.broadcast %cst : f32 to vector<32x128xf32>
    %c0_i32_2 = arith.constant 0 : i32
    %c128_i32 = arith.constant 128 : i32
    %5 = arith.muli %c0_i32_2, %c128_i32 : i32
    %6 = tpu.assume_multiple %5, 128 : i32
    %c0_3 = arith.constant 0 : index
    %7 = arith.index_cast %6 : i32 to index
    %8 = vector.load %arg6[%c0_3, %7] : memref<32x128xf32, #tpu.memory_space<vmem>>, vector<32x128xf32>
    %9 = tpu.iota {dimensions = array<i32: 0>} : vector<128x128xi32>
    %c128_i32_4 = arith.constant 128 : i32
    %10 = arith.muli %c0_i32_2, %c128_i32_4 : i32
    %11 = vector.broadcast %10 : i32 to vector<128x128xi32>
    %12 = arith.addi %9, %11 : vector<128x128xi32>
    %13 = vector.broadcast %3 : vector<1x128xi32> to vector<128x128xi32>
    %14 = arith.cmpi eq, %12, %13 : vector<128x128xi32>
    %15 = arith.extui %14 : vector<128x128xi1> to vector<128x128xi32>
    %16 = arith.sitofp %15 : vector<128x128xi32> to vector<128x128xf32>
    %cst_5 = arith.constant dense<0.000000e+00> : vector<32x128xf32>
    %17 = tpu.matmul %8, %16, %cst_5 {dimension_numbers = #tpu.dot_dimension_numbers<[1], [0], [0], [1], [0, 0, 1, 1], [], []>} : vector<32x128xf32>, vector<128x128xf32>, vector<32x128xf32> -> vector<32x128xf32>
    %18 = arith.addf %4, %17 : vector<32x128xf32>
    %c1_i32 = arith.constant 1 : i32
    %c0_6 = arith.constant 0 : index
    %c0_7 = arith.constant 0 : index
    %19 = vector.load %arg5[%c0_6, %c0_7] : memref<32x128xf32, #tpu.memory_space<vmem>>, vector<32x128xf32>
    tpu.vector_store %arg5[%c0_6, %c0_7], %18 {strides = array<i32>} : memref<32x128xf32, #tpu.memory_space<vmem>>, vector<32x128xf32>,
    return
  }
  func.func @transform_0(%arg0: i32) -> (i32, i32) {
    %c0_i32 = arith.constant 0 : i32
    %c0_i32_0 = arith.constant 0 : i32
    return %c0_i32, %arg0 : i32, i32
  }
  func.func @transform_1(%arg0: i32) -> (i32, i32) {
    %c0_i32 = arith.constant 0 : i32
    %c0_i32_0 = arith.constant 0 : i32
    %c0_i32_1 = arith.constant 0 : i32
    return %c0_i32, %c0_i32_0 : i32, i32
  }
  func.func @transform_2(%arg0: i32) -> (i32, i32) {
    %c0_i32 = arith.constant 0 : i32
    %c0_i32_0 = arith.constant 0 : i32
    %c0_i32_1 = arith.constant 0 : i32
    return %c0_i32, %c0_i32_0 : i32, i32
  }
  func.func @transform_3(%arg0: i32) -> (i32, i32) {
    %c0_i32 = arith.constant 0 : i32
    %c0_i32_0 = arith.constant 0 : i32
    %c0_i32_1 = arith.constant 0 : i32
    return %c0_i32, %c0_i32_0 : i32, i32
  }
  func.func @transform_4(%arg0: i32) -> (i32, i32) {
    %c0_i32 = arith.constant 0 : i32
    %c0_i32_0 = arith.constant 0 : i32
    return %c0_i32, %arg0 : i32, i32
  }
}

</mosaic_0001>

<bundles_post_ra>
// kernel: tpu_custom_call.1
= control target key start
LH: loop header
LB: loop body
LE: loop exit
PB: predicated region body
PF: predicated region fallthrough
CT: control target
= control target key end

     0   :  { %9 = vsyncpa [#allocation4], 0  ;;  %s574_s0 = inlined_call_operand.vmem [shape: s32[1,128], index: 0, kind: input, shape index: {}]   ;;  %s575_s1 = inlined_call_operand.vmem [shape: f32[32,128], index: 1, kind: input, shape index: {}]   ;;  %s576_s2 = inlined_call_operand.hbm [shape: f32[32,32], index: 2, kind: input, shape index: {}]   ;;  %s577_s3 = inlined_call_operand.vmem [shape: f32[32,1], index: 3, kind: input, shape index: {}]   ;;  %s578_s4 = inlined_call_operand.hbm [shape: f32[32,128], index: 4, kind: output, shape index: {}]  }
   0x1   :  { %10 = vsyncpa [#allocation5], 0  ;;  %s19_s17 = sshll.u32 %s576_s2, 4  ;;  %s368_s18 = smov [#allocation3]   ;;  %s20_s17 = int_to_ptr.hbm [resolvable:$true] %s19_s17 }
   0x2   :  { %s21_s19 = sshll.u32 %s368_s18, 4  ;;  %s369_s20 = smov 128   ;;  %s22_s19 = int_to_ptr.vmem [resolvable:$true] %s21_s19 }
   0x3   :  { %s370_s21 = smov 8  }
   0x4   :  { %27 = dma.hbm_to_vmem [thread:$0]  %s20_s17, 512, %s22_s19, [#allocation4], %s369_s20, %s369_s20, %s370_s21  }
   0x5   :  { %364 = dma.done.wait [#allocation4], 512  }
   0x6   :  { %365 = vsyncadd [#allocation4], 4294966784  ;;  %v371_v0 = vmov 0   ;;  %v45_v1 = vld [vmem:[%s575_s1 + $0x18] sm:$0xff]  ;;  %v44_v2 = vld [vmem:[%s575_s1 + $0x10] sm:$0xff]  ;;  %v121_v3 = vlaneseq  ;;  %vm70_vm0 = vcmask 261120  }
   0x7   :  { %314 = vset.pattern.permute.xlu1 %v371_v0  ;;  %313 = vset.pattern.permute.xlu0 %v371_v0  ;;  %v49_v4 = vld [vmem:[%s577_s3 + $0x18] sm:$0xff]  ;;  %v43_v5 = vld [vmem:[%s575_s1 + $0x8] sm:$0xff]  ;;  %v48_v6 = vld [vmem:[%s577_s3 + $0x10] sm:$0xff]  ;;  %v372_v16 = vmov 1.0   ;;  %s226_s14 = sshll.u32 %s578_s4, 4  ;;  %s227_s14 = int_to_ptr.hbm [resolvable:$true] %s226_s14 }
   0x8   :  { %95 = vmatpush.msra.mxu0 %v45_v1  ;;  %67 = vperm.xlu1 %314, %v49_v4   ;;  %v420_v7 = vshrl.u32 %v121_v3, 7  ;;  %v42_v8 = vld [vmem:[%s575_s1] sm:$0xff]  ;;  %v47_v17 = vld [vmem:[%s577_s3 + $0x8] sm:$0xff]  ;;  %v40_v26 = vld [vmem:[#allocation3 + $0x10] sm:$0xff] }
   0x9   :  { %62 = vperm.xlu0 %313, %v48_v6   ;;  %v429_v10 = vld [vmem:[%s574_s0] ss:$0 sm:$0xff]  ;;  %v39_v21 = vld [vmem:[#allocation3 + $0x8] sm:$0xff]  ;;  %v41_v27 = vld [vmem:[#allocation3 + $0x18] sm:$0xff] }
   0xa   :  { %96 = vmatpush.msra.mxu0 %v44_v2  ;;  %v137_v9 = vadd.s32 120, %v420_v7  ;;  %v136_v11 = vadd.s32 112, %v420_v7  ;;  %v38_v12 = vld [vmem:[#allocation3] sm:$0xff]  ;;  %v135_v13 = vadd.s32 104, %v420_v7  ;;  %v134_v14 = vadd.s32 96, %v420_v7 }
   0xb   :  { %v46_v15 = vld [vmem:[%s577_s3] sm:$0xff]  ;;  %v133_v18 = vadd.s32 88, %v420_v7  ;;  %v132_v19 = vadd.s32 80, %v420_v7  ;;  %v131_v20 = vadd.s32 72, %v420_v7  ;;  %v130_v22 = vadd.s32 64, %v420_v7  ;;  %s373_s3 = smov [#allocation6]  }
   0xc   :  { %97 = vmatpush.msra.mxu0 %v43_v5  ;;  %vm154_vm1 = vcmp.eq.s32.totalorder %v137_v9, %v429_v10  ;;  %vm153_vm2 = vcmp.eq.s32.totalorder %v136_v11, %v429_v10  ;;  %vm152_vm3 = vcmp.eq.s32.totalorder %v135_v13, %v429_v10  ;;  %vm151_vm4 = vcmp.eq.s32.totalorder %v134_v14, %v429_v10  ;;  %s224_s11 = sshll.u32 %s373_s3, 4  ;;  %s225_s11 = int_to_ptr.vmem [resolvable:$true] %s224_s11 }
   0xd   :  { %259 = vmatpush.msk.msra.mxu1 %vm154_vm1, %v372_v16  ;;  %275 = vmatpush.msk.msra.mxu2 %vm154_vm1, %v372_v16  ;;  %vm150_vm5 = vcmp.eq.s32.totalorder %v133_v18, %v429_v10  ;;  %vm149_vm6 = vcmp.eq.s32.totalorder %v132_v19, %v429_v10  ;;  %vm148_vm7 = vcmp.eq.s32.totalorder %v131_v20, %v429_v10  ;;  %v129_v23 = vadd.s32 56, %v420_v7 }
   0xe   :  { %98 = vmatpush.msra.mxu0 %v42_v8  ;;  %276 = vmatpush.msk.msra.mxu3 %vm154_vm1, %v372_v16  ;;  %vm147_vm8 = vcmp.eq.s32.totalorder %v130_v22, %v429_v10  ;;  %v128_v24 = vadd.s32 48, %v420_v7  ;;  %v127_v25 = vadd.s32 40, %v420_v7  ;;  %v126_v28 = vadd.s32 32, %v420_v7 }
   0xf   :  { %239 = vmatmul.msk.f32.vlgmr.msra.gmra.mxu0 %vm70_vm0, %v38_v12  ;;  %260 = vmatpush.msk.msra.mxu1 %vm153_vm2, %v372_v16  ;;  %vm146_vm9 = vcmp.eq.s32.totalorder %v129_v23, %v429_v10  ;;  %v125_v29 = vadd.s32 24, %v420_v7  ;;  %v124_v30 = vadd.s32 16, %v420_v7  ;;  %v123_v31 = vadd.s32 8, %v420_v7 }
  0x10   :  { %52 = vperm.xlu1 %314, %v46_v15   ;;  %277 = vmatpush.msk.msra.mxu2 %vm153_vm2, %v372_v16  ;;  %vm145_vm10 = vcmp.eq.s32.totalorder %v128_v24, %v429_v10  ;;  %vm144_vm11 = vcmp.eq.s32.totalorder %v127_v25, %v429_v10  ;;  %vm143_vm12 = vcmp.eq.s32.totalorder %v126_v28, %v429_v10 }
  0x11   :  { %57 = vperm.xlu0 %313, %v47_v17   ;;  %261 = vmatpush.msk.msra.mxu1 %vm152_vm3, %v372_v16  ;;  %vm142_vm13 = vcmp.eq.s32.totalorder %v125_v29, %v429_v10  ;;  %vm141_vm14 = vcmp.eq.s32.totalorder %v124_v30, %v429_v10  ;;  %vm140_vm15 = vcmp.eq.s32.totalorder %v123_v31, %v429_v10 }
  0x12   :  { %279 = vmatpush.msk.msra.mxu2 %vm152_vm3, %v372_v16  ;;  %278 = vmatpush.msk.msra.mxu3 %vm153_vm2, %v372_v16 }
  0x13   :  { %262 = vmatpush.msk.msra.mxu1 %vm151_vm4, %v372_v16 }
  0x14   :  { %281 = vmatpush.msk.msra.mxu2 %vm151_vm4, %v372_v16  ;;  %280 = vmatpush.msk.msra.mxu3 %vm152_vm3, %v372_v16 }
  0x15   :  { %263 = vmatpush.msk.msra.mxu1 %vm150_vm5, %v372_v16 }
  0x16   :  { %283 = vmatpush.msk.msra.mxu2 %vm150_vm5, %v372_v16  ;;  %282 = vmatpush.msk.msra.mxu3 %vm151_vm4, %v372_v16 }
  0x17   :  { %240 = vmatmul.msk.f32.gmra.mxu0 %vm70_vm0, %v39_v21  ;;  %264 = vmatpush.msk.msra.mxu1 %vm149_vm6, %v372_v16 }
  0x18   :  { %285 = vmatpush.msk.msra.mxu2 %vm149_vm6, %v372_v16  ;;  %284 = vmatpush.msk.msra.mxu3 %vm150_vm5, %v372_v16 }
  0x19   :  { %265 = vmatpush.msk.msra.mxu1 %vm148_vm7, %v372_v16 }
  0x1a   :  { %287 = vmatpush.msk.msra.mxu2 %vm148_vm7, %v372_v16  ;;  %286 = vmatpush.msk.msra.mxu3 %vm149_vm6, %v372_v16 }
  0x1b   :  { %266 = vmatpush.msk.msra.mxu1 %vm147_vm8, %v372_v16 }
  0x1c   :  { %289 = vmatpush.msk.msra.mxu2 %vm147_vm8, %v372_v16  ;;  %288 = vmatpush.msk.msra.mxu3 %vm148_vm7, %v372_v16 }
  0x1d   :  { %267 = vmatpush.msk.msra.mxu1 %vm146_vm9, %v372_v16 }
  0x1e   :  { %291 = vmatpush.msk.msra.mxu2 %vm146_vm9, %v372_v16  ;;  %290 = vmatpush.msk.msra.mxu3 %vm147_vm8, %v372_v16 }
  0x1f   :  { %241 = vmatmul.msk.f32.gmra.mxu0 %vm70_vm0, %v40_v26  ;;  %268 = vmatpush.msk.msra.mxu1 %vm145_vm10, %v372_v16 }
  0x20   :  { %293 = vmatpush.msk.msra.mxu2 %vm145_vm10, %v372_v16  ;;  %292 = vmatpush.msk.msra.mxu3 %vm146_vm9, %v372_v16 }
  0x21   :  { %269 = vmatpush.msk.msra.mxu1 %vm144_vm11, %v372_v16 }
  0x22   :  { %295 = vmatpush.msk.msra.mxu2 %vm144_vm11, %v372_v16  ;;  %294 = vmatpush.msk.msra.mxu3 %vm145_vm10, %v372_v16 }
  0x23   :  { %270 = vmatpush.msk.msra.mxu1 %vm143_vm12, %v372_v16 }
  0x24   :  { %296 = vmatpush.msk.msra.mxu3 %vm144_vm11, %v372_v16  ;;  %297 = vmatpush.msk.msra.mxu2 %vm143_vm12, %v372_v16 }
  0x25   :  { %271 = vmatpush.msk.msra.mxu1 %vm142_vm13, %v372_v16 }
  0x26   :  { %298 = vmatpush.msk.msra.mxu3 %vm143_vm12, %v372_v16  ;;  %299 = vmatpush.msk.msra.mxu2 %vm142_vm13, %v372_v16 }
  0x27   :  { %242 = vmatmul.msk.f32.gmra.mxu0 %vm70_vm0, %v41_v27  ;;  %272 = vmatpush.msk.msra.mxu1 %vm141_vm14, %v372_v16  ;;  %vm139_vm0 = vcmp.eq.s32.totalorder %v420_v7, %v429_v10 }
  0x28   :  { %300 = vmatpush.msk.msra.mxu3 %vm142_vm13, %v372_v16  ;;  %301 = vmatpush.msk.msra.mxu2 %vm141_vm14, %v372_v16 }
  0x29   :  { %273 = vmatpush.msk.msra.mxu1 %vm140_vm15, %v372_v16 }
  0x2a   :  { %302 = vmatpush.msk.msra.mxu3 %vm141_vm14, %v372_v16  ;;  %303 = vmatpush.msk.msra.mxu2 %vm140_vm15, %v372_v16 }
  0x2b   :  { %274 = vmatpush.msk.msra.mxu1 %vm139_vm0, %v372_v16 }
  0x2c   :  { %304 = vmatpush.msk.msra.mxu3 %vm140_vm15, %v372_v16  ;;  %305 = vmatpush.msk.msra.mxu2 %vm139_vm0, %v372_v16 }
  0x2e   :  { %306 = vmatpush.msk.msra.mxu3 %vm139_vm0, %v372_v16 }
  0x7a   :  { %v68_v32 = vpop.permute.xlu1 %67 }
  0x7b   :  { %v63_v33 = vpop.permute.xlu0 %62 }
  0x82   :  { %v53_v34 = vpop.permute.xlu1 %52 }
  0x83   :  { %v58_v37 = vpop.permute.xlu0 %57 }
  0x8c   :  { %v100_v35 = vpop.f32.mrf.mxu0 }
  0x8d   :  { %v101_v36 = vadd.f32 %v100_v35, %v53_v34 }
  0x8f   :  { %203 = vmatmul.f32.vlgmr.msra.gmra.mxu1 %v101_v36 }
  0x94   :  { %v103_v38 = vpop.f32.mrf.mxu0 }
  0x95   :  { %v104_v39 = vadd.f32 %v103_v38, %v58_v37 }
  0x97   :  { %206 = vmatmul.f32.vlgmr.msra.gmra.mxu2 %v104_v39 }
  0x9c   :  { %v106_v40 = vpop.f32.mrf.mxu0 }
  0x9d   :  { %v107_v41 = vadd.f32 %v106_v40, %v63_v33 }
  0x9f   :  { %209 = vmatmul.f32.vlgmr.msra.gmra.mxu3 %v107_v41 }
  0xa4   :  { %v109_v42 = vpop.f32.mrf.mxu0 }
  0xa5   :  { %v110_v43 = vadd.f32 %v109_v42, %v68_v32 }
  0xa7   :  { %212 = vmatmul.f32.gmra.mxu3 %v110_v43 }
 0x10c   :  { %v204_v44 = vpop.f32.mrf.mxu1 }
 0x10d   :  { %216 = vst [vmem:[#allocation6] sm:$0xff] %v204_v44 }
 0x11a   :  { %v207_v45 = vpop.f32.mrf.mxu2 }
 0x11b   :  { %217 = vst [vmem:[#allocation6 + $0x8] sm:$0xff] %v207_v45 }
 0x122   :  { %v210_v46 = vpop.f32.mrf.mxu3 }
 0x123   :  { %218 = vst [vmem:[#allocation6 + $0x10] sm:$0xff] %v210_v46 }
 0x12a   :  { %v213_v47 = vpop.f32.mrf.mxu3 }
 0x12b   :  { %219 = vst [vmem:[#allocation6 + $0x18] sm:$0xff] %v213_v47 }
 0x12c   :  { %232 = dma.vmem_to_hbm [thread:$0]  %s225_s11, 512, %s227_s14, [#allocation5], %s369_s20, %s369_s20, %s370_s21  }
 0x12d   :  { %366 = dma.done.wait [#allocation5], 512  }
 0x12e   :  { %367 = vsyncadd [#allocation5], 4294966784 }
 0x12f   :  { %237 = vsyncpa [#allocation4], 1 }
 0x130   :  { %238 = vsyncpa [#allocation5], 1 }

</bundles_post_ra>
